<compile_context>
chip_gen: v6e
topology: v6e:2x2x1
jax: 0.10.0
libtpu: 0.0.40
codegen_flags: <defaults>
</compile_context>

<pallas_src>
import functools

import jax
import jax.numpy as jnp
import numpy as np
from jax.experimental import pallas as pl
from jax.experimental.pallas import tpu as pltpu

_LANE = 128      # lane width (last dim)
_SUBLANE = 8     # sublane width (second-to-last dim)
_MIB = 1024 * 1024


def _round_up(n, m):
    return ((n + m - 1) // m) * m


def _device_kind():
    try:
        return jax.devices()[0].device_kind.lower()
    except Exception:
        return ""


def _is_v5e(kind):
    return ("v5 lite" in kind) or ("v5e" in kind) or ("v5litepod" in kind)


def _is_v7(kind):
    return "v7" in kind


def _feature_align(dim, kind):
    # v6e/v7x MXUs are 2x256^2: 256-align true dims >= 256 so each pass fills
    # the systolic array.  v5e's MXU is 4x128^2, so 128 alignment is already
    # optimal there, and small dims stay at 128 to avoid extra zero work.
    if dim >= 256 and not _is_v5e(kind):
        return 256
    return _LANE


def _pad_axis_to(a, axis, size):
    pad = size - a.shape[axis]
    if pad == 0:
        return a
    widths = [(0, 0)] * a.ndim
    widths[axis] = (0, pad)
    return jnp.pad(a, widths)


def _mlp_kernel(x_ref, w1_ref, b1_ref, w2_ref, b2_ref, o_ref):
    # Cast the streamed f32 x tile to the weight compute dtype in-kernel (VPU
    # cast hides under MXU work; avoids a separate wrapper-side cast pass).
    x = x_ref[...].astype(w1_ref.dtype)
    # fc1 on the MXU with f32 accumulation; bias + ReLU in f32 on the VPU.
    h = jnp.dot(x, w1_ref[...], preferred_element_type=jnp.float32)
    h = jnp.maximum(h + b1_ref[...], 0.0)
    # fc2: cast activations once to the compute dtype, f32 accumulation,
    # f32 bias, single cast on the lane-dense store.
    y = jnp.dot(h.astype(w2_ref.dtype), w2_ref[...],
                preferred_element_type=jnp.float32)
    o_ref[...] = (y + b2_ref[...]).astype(o_ref.dtype)


def prepare_relu_net_params(w1_t, b1, w2_t, b2, *, compute_dtype=jnp.bfloat16):
    """One-time parameter prep, hoisted out of the per-call path.

    Zero-pads feature dims to MXU-friendly multiples (exact math — padded
    lanes are sliced off the output) and casts the matmul operands to the
    compute dtype.  Biases stay f32 so the epilogue runs on the f32
    accumulator.  w1_t: (in, hidden), w2_t: (hidden, out), biases 1-D.
    """
    kind = _device_kind()
    in_f, hid_f = w1_t.shape
    out_f = w2_t.shape[1]
    in_p = _round_up(in_f, _feature_align(in_f, kind))
    hid_p = _round_up(hid_f, _feature_align(hid_f, kind))
    out_p = _round_up(out_f, _feature_align(out_f, kind))

    w1_p = _pad_axis_to(_pad_axis_to(w1_t, 0, in_p), 1, hid_p).astype(compute_dtype)
    w2_p = _pad_axis_to(_pad_axis_to(w2_t, 0, hid_p), 1, out_p).astype(compute_dtype)
    b1_p = _pad_axis_to(jnp.reshape(b1, (1, -1)), 1, hid_p).astype(jnp.float32)
    b2_p = _pad_axis_to(jnp.reshape(b2, (1, -1)), 1, out_p).astype(jnp.float32)
    return {"w1": w1_p, "b1": b1_p, "w2": w2_p, "b2": b2_p, "out_features": out_f}


@functools.partial(jax.jit, static_argnames=("out_features", "block_b"))
def relu_net_forward(x, w1_p, b1_p, w2_p, b2_p, *, out_features, block_b=512):
    """x: (B, in_features) f32.  w*_p / b*_p from prepare_relu_net_params."""
    out_dtype = x.dtype
    B, in_f = x.shape
    in_p, hid_p = w1_p.shape
    out_p = w2_p.shape[1]
    kind = _device_kind()

    # ---- batch tiling -------------------------------------------------------
    # At least 2 tiles when B allows it (feeds both v7x TensorCores; the extra
    # ~0.35us grid step is negligible on single-TC parts), and the tile size is
    # chosen to divide the padded batch so padding waste is at most one
    # sublane group rather than a whole block.
    n_tiles = max(pl.cdiv(B, block_b), 2 if B >= 2 * _SUBLANE else 1)
    tb = _round_up(pl.cdiv(B, n_tiles), _SUBLANE)
    b_pad = _round_up(B, tb)
    grid = (b_pad // tb,)

    # Single pad of x (batch rows + feature lanes); no dtype cast here — the
    # cast to the compute dtype happens inside the kernel.
    x_p = jnp.pad(x, ((0, b_pad - B), (0, in_p - in_f)))

    c_itm = jnp.dtype(w1_p.dtype).itemsize
    x_itm = jnp.dtype(x.dtype).itemsize
    o_itm = jnp.dtype(out_dtype).itemsize

    cost = pl.CostEstimate(
        flops=2 * b_pad * (in_p * hid_p + hid_p * out_p),
        transcendentals=0,
        bytes_accessed=(b_pad * in_p * x_itm
                        + (in_p * hid_p + hid_p * out_p) * c_itm
                        + (hid_p + out_p) * 4
                        + b_pad * out_p * o_itm),
    )

    # VMEM budget: double-buffered x/out tiles, single-buffered resident
    # weights/biases (constant index_map => Buffered(1)), f32 h/y temporaries
    # plus the compute-dtype copy of h feeding the second matmul.
    vmem_bytes = (
        2 * tb * in_p * x_itm
        + 2 * tb * out_p * o_itm
        + (in_p * hid_p + hid_p * out_p) * c_itm
        + (hid_p + out_p) * 4
        + 4 * tb * (hid_p + out_p)
        + tb * hid_p * c_itm
    )
    cap = (48 * _MIB) if _is_v7(kind) else (96 * _MIB)   # 64 MiB vs 128 MiB parts
    vmem_limit = int(min(max(2 * vmem_bytes, 16 * _MIB), cap))

    # TODO(synk): for weights too large to sit VMEM-resident even single-buffered,
    # add an "arbitrary" hidden-dim grid axis with an f32 accumulator (P3 pattern).
    resident = dict(pipeline_mode=pl.Buffered(1))
    out_padded = pl.pallas_call(
        _mlp_kernel,
        out_shape=jax.ShapeDtypeStruct((b_pad, out_p), out_dtype),
        grid=grid,
        in_specs=[
            pl.BlockSpec((tb, in_p), lambda i: (i, 0)),                  # x tile (streamed)
            pl.BlockSpec((in_p, hid_p), lambda i: (0, 0), **resident),   # w1 (resident)
            pl.BlockSpec((1, hid_p), lambda i: (0, 0), **resident),      # b1 (resident)
            pl.BlockSpec((hid_p, out_p), lambda i: (0, 0), **resident),  # w2 (resident)
            pl.BlockSpec((1, out_p), lambda i: (0, 0), **resident),      # b2 (resident)
        ],
        out_specs=pl.BlockSpec((tb, out_p), lambda i: (i, 0)),           # lane-dense store
        compiler_params=pltpu.CompilerParams(
            dimension_semantics=("parallel",),   # batch tiles across TCs (v7x)
            vmem_limit_bytes=vmem_limit,
        ),
        cost_estimate=cost,
    )(x_p, w1_p, b1_p, w2_p, b2_p)

    return out_padded[:B, :out_features]


def init_relu_net_params(key, input_size, hidden_size, output_size, dtype=jnp.float32):
    """Matches ReLU_Net.__init__:
       fc1.weight ~ N(0, 1), fc2.weight ~ N(0, 1/sqrt(hidden)), biases zero."""
    k1, k2 = jax.random.split(key)
    # PyTorch Linear weight is (out_features, in_features); store transposed.
    w1 = jax.random.normal(k1, (hidden_size, input_size), dtype)
    w2 = jax.random.normal(k2, (output_size, hidden_size), dtype) * (1.0 / np.sqrt(hidden_size))
    b1 = jnp.zeros((hidden_size,), dtype)
    b2 = jnp.zeros((output_size,), dtype)
    return w1.T, b1, w2.T, b2


if __name__ == "__main__":
    # Small shapes consistent with the module's forward (2-D input to nn.Linear).
    batch, input_size, hidden_size, output_size = 8, 32, 64, 16

    key = jax.random.PRNGKey(0)
    k_x, k_p = jax.random.split(key)
    x = jax.random.normal(k_x, (batch, input_size), jnp.float32)
    w1_t, b1, w2_t, b2 = init_relu_net_params(k_p, input_size, hidden_size, output_size)

    # Pure-JAX f32 reference of the same math.
    ref = jnp.maximum(x @ w1_t + b1[None, :], 0.0) @ w2_t + b2[None, :]

    # Fast path (default on all generations): bf16 MXU operands, f32
    # accumulation + f32 bias/ReLU epilogue.  Tolerance sized for bf16 operands.
    p_bf16 = prepare_relu_net_params(w1_t, b1, w2_t, b2, compute_dtype=jnp.bfloat16)
    out_bf16 = jax.block_until_ready(
        relu_net_forward(x, p_bf16["w1"], p_bf16["b1"], p_bf16["w2"], p_bf16["b2"],
                         out_features=p_bf16["out_features"]))
    np.testing.assert_allclose(np.asarray(out_bf16), np.asarray(ref),
                               rtol=1e-1, atol=1e-1)

    # Exactness check: f32 operands end-to-end, tight tolerance.
    p_f32 = prepare_relu_net_params(w1_t, b1, w2_t, b2, compute_dtype=jnp.float32)
    out_f32 = jax.block_until_ready(
        relu_net_forward(x, p_f32["w1"], p_f32["b1"], p_f32["w2"], p_f32["b2"],
                         out_features=p_f32["out_features"]))
    np.testing.assert_allclose(np.asarray(out_f32), np.asarray(ref),
                               rtol=1e-5, atol=1e-5)

    print("KERNEL_OK")
</pallas_src>

<mosaic_0001>
module attributes {stable_mosaic.version = 11 : i64} {
  func.func @_mlp_kernel(%arg0: i32, %arg1: memref<8x128xf32, #tpu.memory_space<vmem>>, %arg2: memref<128x128xbf16, #tpu.memory_space<vmem>>, %arg3: memref<1x128xf32, #tpu.memory_space<vmem>>, %arg4: memref<128x128xbf16, #tpu.memory_space<vmem>>, %arg5: memref<1x128xf32, #tpu.memory_space<vmem>>, %arg6: memref<8x128xf32, #tpu.memory_space<vmem>>) attributes {dimension_semantics = [#tpu.dimension_semantics<parallel>], iteration_bounds = array<i64: 1>, scalar_prefetch = 0 : i64, scratch_operands = 0 : i64, tpu.core_type = #tpu.core_type<tc>, window_params = [{transform_indices = @transform_0, window_bounds = array<i64: 8, 128>}, {pipeline_mode = #tpu.pipeline_mode<synchronous>, transform_indices = @transform_1, window_bounds = array<i64: 128, 128>}, {pipeline_mode = #tpu.pipeline_mode<synchronous>, transform_indices = @transform_2, window_bounds = array<i64: 1, 128>}, {pipeline_mode = #tpu.pipeline_mode<synchronous>, transform_indices = @transform_3, window_bounds = array<i64: 128, 128>}, {pipeline_mode = #tpu.pipeline_mode<synchronous>, transform_indices = @transform_4, window_bounds = array<i64: 1, 128>}, {transform_indices = @transform_5, window_bounds = array<i64: 8, 128>}]} {
    %c0 = arith.constant 0 : index
    %c0_0 = arith.constant 0 : index
    %0 = vector.load %arg1[%c0, %c0_0] : memref<8x128xf32, #tpu.memory_space<vmem>>, vector<8x128xf32>
    %1 = arith.truncf %0 : vector<8x128xf32> to vector<8x128xbf16>
    %c0_1 = arith.constant 0 : index
    %c0_2 = arith.constant 0 : index
    %2 = vector.load %arg2[%c0_1, %c0_2] : memref<128x128xbf16, #tpu.memory_space<vmem>>, vector<128x128xbf16>
    %cst = arith.constant dense<0.000000e+00> : vector<8x128xf32>
    %3 = tpu.matmul %1, %2, %cst {dimension_numbers = #tpu.dot_dimension_numbers<[1], [0], [0], [1], [0, 0, 1, 1], [], []>} : vector<8x128xbf16>, vector<128x128xbf16>, vector<8x128xf32> -> vector<8x128xf32>
    %c0_3 = arith.constant 0 : index
    %c0_4 = arith.constant 0 : index
    %4 = vector.load %arg3[%c0_3, %c0_4] : memref<1x128xf32, #tpu.memory_space<vmem>>, vector<1x128xf32>
    %5 = vector.broadcast %4 : vector<1x128xf32> to vector<8x128xf32>
    %6 = arith.addf %3, %5 : vector<8x128xf32>
    %cst_5 = arith.constant 0.000000e+00 : f32
    %7 = vector.broadcast %cst_5 : f32 to vector<8x128xf32>
    %8 = arith.maximumf %6, %7 : vector<8x128xf32>
    %9 = arith.truncf %8 : vector<8x128xf32> to vector<8x128xbf16>
    %c0_6 = arith.constant 0 : index
    %c0_7 = arith.constant 0 : index
    %10 = vector.load %arg4[%c0_6, %c0_7] : memref<128x128xbf16, #tpu.memory_space<vmem>>, vector<128x128xbf16>
    %cst_8 = arith.constant dense<0.000000e+00> : vector<8x128xf32>
    %11 = tpu.matmul %9, %10, %cst_8 {dimension_numbers = #tpu.dot_dimension_numbers<[1], [0], [0], [1], [0, 0, 1, 1], [], []>} : vector<8x128xbf16>, vector<128x128xbf16>, vector<8x128xf32> -> vector<8x128xf32>
    %c0_9 = arith.constant 0 : index
    %c0_10 = arith.constant 0 : index
    %12 = vector.load %arg5[%c0_9, %c0_10] : memref<1x128xf32, #tpu.memory_space<vmem>>, vector<1x128xf32>
    %13 = vector.broadcast %12 : vector<1x128xf32> to vector<8x128xf32>
    %14 = arith.addf %11, %13 : vector<8x128xf32>
    %c0_11 = arith.constant 0 : index
    %c0_12 = arith.constant 0 : index
    %15 = vector.load %arg6[%c0_11, %c0_12] : memref<8x128xf32, #tpu.memory_space<vmem>>, vector<8x128xf32>
    tpu.vector_store %arg6[%c0_11, %c0_12], %14 {strides = array<i32>} : memref<8x128xf32, #tpu.memory_space<vmem>>, vector<8x128xf32>,
    return
  }
  func.func @transform_0(%arg0: i32) -> (i32, i32) {
    %c0_i32 = arith.constant 0 : i32
    %c0_i32_0 = arith.constant 0 : i32
    return %arg0, %c0_i32 : i32, i32
  }
  func.func @transform_1(%arg0: i32) -> (i32, i32) {
    %c0_i32 = arith.constant 0 : i32
    %c0_i32_0 = arith.constant 0 : i32
    %c0_i32_1 = arith.constant 0 : i32
    return %c0_i32, %c0_i32_0 : i32, i32
  }
  func.func @transform_2(%arg0: i32) -> (i32, i32) {
    %c0_i32 = arith.constant 0 : i32
    %c0_i32_0 = arith.constant 0 : i32
    %c0_i32_1 = arith.constant 0 : i32
    return %c0_i32, %c0_i32_0 : i32, i32
  }
  func.func @transform_3(%arg0: i32) -> (i32, i32) {
    %c0_i32 = arith.constant 0 : i32
    %c0_i32_0 = arith.constant 0 : i32
    %c0_i32_1 = arith.constant 0 : i32
    return %c0_i32, %c0_i32_0 : i32, i32
  }
  func.func @transform_4(%arg0: i32) -> (i32, i32) {
    %c0_i32 = arith.constant 0 : i32
    %c0_i32_0 = arith.constant 0 : i32
    %c0_i32_1 = arith.constant 0 : i32
    return %c0_i32, %c0_i32_0 : i32, i32
  }
  func.func @transform_5(%arg0: i32) -> (i32, i32) {
    %c0_i32 = arith.constant 0 : i32
    %c0_i32_0 = arith.constant 0 : i32
    return %arg0, %c0_i32 : i32, i32
  }
}

</mosaic_0001>

<bundles_post_ra>
// kernel: relu_net_forward.1
= control target key start
LH: loop header
LB: loop body
LE: loop exit
PB: predicated region body
PF: predicated region fallthrough
CT: control target
= control target key end

     0   :  { %10 = vsyncpa [#allocation3], 0  ;;  %s513_s0 = inlined_call_operand.vmem [shape: f32[8,128], index: 0, kind: input, shape index: {}]   ;;  %s514_s1 = inlined_call_operand.hbm [shape: bf16[128,128], index: 1, kind: input, shape index: {}]   ;;  %s515_s2 = inlined_call_operand.vmem [shape: f32[1,128], index: 2, kind: input, shape index: {}]   ;;  %s516_s3 = inlined_call_operand.hbm [shape: bf16[128,128], index: 3, kind: input, shape index: {}]   ;;  %s517_s4 = inlined_call_operand.vmem [shape: f32[1,128], index: 4, kind: input, shape index: {}]   ;;  %s518_s5 = inlined_call_operand.hbm [shape: f32[8,128], index: 5, kind: output, shape index: {}]  }
   0x1   :  { %11 = vsyncpa [#allocation6], 0 }
   0x2   :  { %12 = vsyncpa [#allocation4], 0  ;;  %s458_s18 = smov [#allocation2]  }
   0x3   :  { %s20_s19 = sshll.u32 %s458_s18, 4  ;;  %s21_s19 = int_to_ptr.vmem [resolvable:$true] %s20_s19 }
   0x4   :  { %s400_s20 = scalar_lea.vmem %s21_s19, 1024  ;;  %p405_p1 = scmp.lt.s32.totalorder %s21_s19, %s21_s19 }
   0x5   :  { %p401_p0 = scmp.ne.s32.totalorder %s21_s19, %s400_s20  ;;  %p406_p2 = scmp.lt.s32.totalorder %s400_s20, %s400_s20 }
   0x7   :  { %p407_p3 = por %p406_p2, %p405_p1 }
   0x9   :  { %p408_p4 = pnand %p407_p3, %p401_p0 }
   0xb   :  { %411 = shalt.err (!%p408_p4)
}
   0xc   :  { %s459_s21 = smov 64   ;;  %s460_s22 = smov 4  }
   0xd   :  { %26 = dma.hbm_to_vmem [thread:$0]  %s514_s1, 1024, %s21_s19, [#allocation3], %s459_s21, %s459_s21, %s460_s22  }
   0xe   :  { %s461_s25 = smov [#allocation5]  }
   0xf   :  { %s34_s26 = sshll.u32 %s461_s25, 4  ;;  %s35_s26 = int_to_ptr.vmem [resolvable:$true] %s34_s26 }
  0x10   :  { %s420_s27 = scalar_lea.vmem %s35_s26, 1024  ;;  %p425_p6 = scmp.lt.s32.totalorder %s35_s26, %s35_s26 }
  0x11   :  { %p421_p5 = scmp.ne.s32.totalorder %s35_s26, %s420_s27  ;;  %p426_p7 = scmp.lt.s32.totalorder %s420_s27, %s420_s27 }
  0x13   :  { %p427_p8 = por %p426_p7, %p425_p6 }
  0x15   :  { %p428_p9 = pnand %p427_p8, %p421_p5 }
  0x17   :  { %431 = shalt.err (!%p428_p9)
}
  0x18   :  { %40 = dma.hbm_to_vmem [thread:$0]  %s516_s3, 1024, %s35_s26, [#allocation6], %s459_s21, %s459_s21, %s460_s22  }
  0x19   :  { %452 = dma.done.wait [#allocation3], 1024  }
  0x1a   :  { %453 = vsyncadd [#allocation3], 4294966272 }
  0x1b   :  { %454 = dma.done.wait [#allocation6], 1024  }
  0x1c   :  { %455 = vsyncadd [#allocation6], 4294966272  ;;  %v462_v0 = vmov 0.0   ;;  %vm463_vm0 = vmmov 0   ;;  %v376_v1 = vld [vmem:[#allocation2 + $0x38] sm:$0xff]   ;;  %v377_v2 = vld [vmem:[#allocation2 + $0x30] sm:$0xff]  }
  0x1d   :  { %329 = vmatprep.subr.bf16.mxu0 %v462_v0  ;;  %345 = vmatprep.mubr.msk.bf16.mxu0 %vm463_vm0, %v462_v0  ;;  %v378_v3 = vld [vmem:[#allocation2 + $0x28] sm:$0xff]   ;;  %v384_v4 = vld [vmem:[#allocation5 + $0x38] sm:$0xff]   ;;  %v379_v5 = vld [vmem:[#allocation2 + $0x20] sm:$0xff]   ;;  %s464_s8 = smov [#allocation7]  }
  0x1e   :  { %349 = vmatprep.subr.bf16.mxu1 %v462_v0  ;;  %365 = vmatprep.mubr.msk.bf16.mxu1 %vm463_vm0, %v462_v0  ;;  %v385_v6 = vld [vmem:[#allocation5 + $0x30] sm:$0xff]   ;;  %v380_v7 = vld [vmem:[#allocation2 + $0x18] sm:$0xff]   ;;  %v386_v8 = vld [vmem:[#allocation5 + $0x28] sm:$0xff]   ;;  %s283_s9 = sshll.u32 %s464_s8, 4  ;;  %s284_s9 = int_to_ptr.vmem [resolvable:$true] %s283_s9 }
  0x1f   :  { %330 = vmatpush3.bf16.msra.mxu0 %v376_v1  ;;  %350 = vmatpush3.bf16.msra.mxu1 %v384_v4  ;;  %v381_v9 = vld [vmem:[#allocation2 + $0x10] sm:$0xff]   ;;  %v387_v10 = vld [vmem:[#allocation5 + $0x20] sm:$0xff]   ;;  %v382_v11 = vld [vmem:[#allocation2 + $0x8] sm:$0xff]   ;;  %p437_p11 = scmp.lt.s32.totalorder %s284_s9, %s284_s9 }
  0x20   :  { %331 = vmatprep.subr.bf16.mxu0 %v462_v0  ;;  %351 = vmatprep.subr.bf16.mxu1 %v462_v0  ;;  %v388_v12 = vld [vmem:[#allocation5 + $0x18] sm:$0xff]   ;;  %v383_v13 = vld [vmem:[#allocation2] sm:$0xff]   ;;  %v389_v15 = vld [vmem:[#allocation5 + $0x10] sm:$0xff]  }
  0x21   :  { %v50_v14 = vld [vmem:[%s513_s0] sm:$0xff]  ;;  %v390_v17 = vld [vmem:[#allocation5 + $0x8] sm:$0xff]  }
  0x22   :  { %v51_v16 = vpack.c.bf16 %v50_v14, %v50_v14  ;;  %v391_v18 = vld [vmem:[#allocation5] sm:$0xff]  }
  0x23   :  { %332 = vmatpush3.bf16.msra.mxu0 %v377_v2  ;;  %352 = vmatpush3.bf16.msra.mxu1 %v385_v6  ;;  %v293_v19 = vld [vmem:[%s515_s2] ss:$0 sm:$0xff]  ;;  %s432_s2 = scalar_lea.vmem %s284_s9, 128 }
  0x24   :  { %333 = vmatprep.subr.bf16.mxu0 %v462_v0  ;;  %353 = vmatprep.subr.bf16.mxu1 %v462_v0  ;;  %v302_v27 = vld [vmem:[%s517_s4] ss:$0 sm:$0xff]  ;;  %p433_p10 = scmp.ne.s32.totalorder %s284_s9, %s432_s2  ;;  %p438_p12 = scmp.lt.s32.totalorder %s432_s2, %s432_s2 }
  0x26   :  { %p439_p13 = por %p438_p12, %p437_p11 }
  0x27   :  { %334 = vmatpush3.bf16.msra.mxu0 %v378_v3  ;;  %354 = vmatpush3.bf16.msra.mxu1 %v386_v8 }
  0x28   :  { %335 = vmatprep.subr.bf16.mxu0 %v462_v0  ;;  %355 = vmatprep.subr.bf16.mxu1 %v462_v0  ;;  %p440_p0 = pnand %p439_p13, %p433_p10 }
  0x2b   :  { %336 = vmatpush3.bf16.msra.mxu0 %v379_v5  ;;  %356 = vmatpush3.bf16.msra.mxu1 %v387_v10 }
  0x2c   :  { %337 = vmatprep.subr.bf16.mxu0 %v462_v0  ;;  %357 = vmatprep.subr.bf16.mxu1 %v462_v0 }
  0x2f   :  { %338 = vmatpush3.bf16.msra.mxu0 %v380_v7  ;;  %358 = vmatpush3.bf16.msra.mxu1 %v388_v12 }
  0x30   :  { %339 = vmatprep.subr.bf16.mxu0 %v462_v0  ;;  %359 = vmatprep.subr.bf16.mxu1 %v462_v0 }
  0x33   :  { %340 = vmatpush3.bf16.msra.mxu0 %v381_v9  ;;  %360 = vmatpush3.bf16.msra.mxu1 %v389_v15 }
  0x34   :  { %341 = vmatprep.subr.bf16.mxu0 %v462_v0  ;;  %361 = vmatprep.subr.bf16.mxu1 %v462_v0 }
  0x37   :  { %342 = vmatpush3.bf16.msra.mxu0 %v382_v11  ;;  %362 = vmatpush3.bf16.msra.mxu1 %v390_v17 }
  0x38   :  { %343 = vmatprep.subr.bf16.mxu0 %v462_v0  ;;  %363 = vmatprep.subr.bf16.mxu1 %v462_v0 }
  0x3b   :  { %344 = vmatpush3.bf16.msra.mxu0 %v383_v13  ;;  %364 = vmatpush3.bf16.msra.mxu1 %v391_v18 }
  0x3e   :  { %346 = vmatmul.mubr.bf16.vlgmr.msra.gmra.mxu0 %v51_v16 }
  0xfe   :  { %v157_v20 = vpop.f32.mrf.mxu0 }
  0xff   :  { %v158_v21 = vadd.f32 %v293_v19, %v157_v20 }
 0x100   :  { %v347_v22 = vpop.f32.mrf.mxu0 }
 0x101   :  { %v163_v23 = vmax.f32 %v158_v21, 0.0 }
 0x102   :  { %v160_v24 = vpop.f32.mrf.mxu0 }
 0x103   :  { %v164_v25 = vpack.c.bf16 %v163_v23, %v163_v23 }
 0x104   :  { %v348_v26 = vpop.f32.mrf.mxu0 }
 0x105   :  { %366 = vmatmul.mubr.bf16.vlgmr.msra.gmra.mxu1 %v164_v25 }
 0x1c5   :  { %v270_v28 = vpop.f32.mrf.mxu1 }
 0x1c6   :  { %v271_v29 = vadd.f32 %v302_v27, %v270_v28 }
 0x1c7   :  { %v367_v30 = vpop.f32.mrf.mxu1 }
 0x1c8   :  { %276 = vst [vmem:[#allocation7] sm:$0xff] %v271_v29 }
 0x1c9   :  { %v273_v31 = vpop.f32.mrf.mxu1 }
 0x1ca   :  { %443 = shalt.err (!%p440_p0)
}
 0x1cb   :  { %286 = dma.vmem_to_hbm [thread:$0]  %s284_s9, 128, %s518_s5, [#allocation4]   ;;  %v368_v32 = vpop.f32.mrf.mxu1 }
 0x1cc   :  { %456 = dma.done.wait [#allocation4], 128  }
 0x1cd   :  { %457 = vsyncadd [#allocation4], 4294967168 }
 0x1ce   :  { %290 = vsyncpa [#allocation3], 1 }
 0x1cf   :  { %291 = vsyncpa [#allocation6], 1 }
 0x1d0   :  { %292 = vsyncpa [#allocation4], 1 }

</bundles_post_ra>
